<compile_context>
chip_gen: v5e
topology: v5e:2x2
jax: 0.10.0
libtpu: 0.0.40
codegen_flags: <defaults>
</compile_context>

<pallas_src>
import jax
import jax.numpy as jnp
from jax.experimental import pallas as pl
from jax.experimental.pallas import tpu as pltpu


def _round_up(x, m):
    return ((x + m - 1) // m) * m


def mlp_kernel(x_ref, w1_ref, b1_ref, w2_ref, b2_ref, out_ref):
    w1 = w1_ref[...]                                    # (in, H_pad)  bf16
    w2 = w2_ref[...]                                    # (H_pad, O_pad) bf16
    xb = x_ref[...].astype(w1.dtype)                    # cast in VMEM (free-ish VPU)
    # fc1: (TB, in) @ (in, H_pad), f32 accumulation on the MXU.
    h = jnp.dot(xb, w1, preferred_element_type=jnp.float32)
    h = jnp.maximum(h + b1_ref[...], 0.0)               # bias + ReLU, lane-dense
    # fc2: (TB, H_pad) @ (H_pad, O_pad), bf16 inputs, f32 accumulation.
    o = jnp.dot(h.astype(w2.dtype), w2, preferred_element_type=jnp.float32)
    o = o + b2_ref[...]
    out_ref[...] = o.astype(out_ref.dtype)               # lane-dense store (O_pad = 128k)


def prepare_params(w1, b1, w2, b2, pad_multiple=128, compute_dtype=jnp.bfloat16):
    """One-time parameter prep (NOT on the per-call path).

    w1: (hidden, in)   PyTorch nn.Linear weight layout
    b1: (hidden,)
    w2: (out, hidden)
    b2: (out,)
    Transposes to (in, out) layout, zero-pads hidden/out dims to lane
    multiples, and stores weights in `compute_dtype` (bf16 by default).
    Padded hidden columns have zero weights and zero bias -> ReLU(0)=0 and
    zero contribution through the zero rows of w2_t; padded output columns
    are exact zeros and optionally sliced off by the wrapper.
    """
    hidden_dim, in_dim = w1.shape
    out_dim = w2.shape[0]
    h_pad = _round_up(hidden_dim, pad_multiple)
    o_pad = _round_up(out_dim, pad_multiple)

    w1_t = jnp.zeros((in_dim, h_pad), compute_dtype).at[:, :hidden_dim].set(
        w1.T.astype(compute_dtype))
    b1_p = jnp.zeros((1, h_pad), jnp.float32).at[0, :hidden_dim].set(
        b1.astype(jnp.float32))
    w2_t = jnp.zeros((h_pad, o_pad), compute_dtype).at[:hidden_dim, :out_dim].set(
        w2.T.astype(compute_dtype))
    b2_p = jnp.zeros((1, o_pad), jnp.float32).at[0, :out_dim].set(
        b2.astype(jnp.float32))

    return dict(w1_t=w1_t, b1=b1_p, w2_t=w2_t, b2=b2_p,
                out_dim=out_dim, in_dim=in_dim)


def _choose_batch_tile(B, max_tb):
    """Pick an MXU-friendly batch tile with at most one partial grid step."""
    n_tiles = pl.cdiv(B, max_tb)
    if B >= 256:
        n_tiles = max(n_tiles, 2)     # give v7x's second TensorCore work
    tb = pl.cdiv(B, n_tiles)
    tb = min(_round_up(tb, 128), _round_up(B, 8))   # MXU M-aligned, never > padded B
    return tb


def multiclass_mlp(x, params, max_batch_tile=1024, slice_output=True):
    """Pallas forward for MulticlassMLP.  x: (B, in_dim)."""
    B, in_dim = x.shape
    assert in_dim == params["in_dim"]
    w1_t, b1, w2_t, b2 = params["w1_t"], params["b1"], params["w2_t"], params["b2"]
    h_pad = w1_t.shape[1]
    o_pad = w2_t.shape[1]
    out_dim = params["out_dim"]
    out_dtype = x.dtype

    tb = _choose_batch_tile(B, max_batch_tile)
    grid = (pl.cdiv(B, tb),)
    # NOTE: the last tile may read out-of-bounds x rows (unspecified values);
    # they only produce output rows >= B, whose stores Pallas drops.

    # VMEM budget (weights conservatively double-buffered + x/out double
    # buffers + f32 intermediates), with headroom, clamped to [16, 64] MiB.
    w_bytes = (w1_t.size * w1_t.dtype.itemsize + w2_t.size * w2_t.dtype.itemsize
               + b1.size * b1.dtype.itemsize + b2.size * b2.dtype.itemsize)
    tile_bytes = (2 * tb * in_dim * x.dtype.itemsize
                  + 2 * tb * o_pad * jnp.dtype(out_dtype).itemsize
                  + tb * h_pad * 4 + tb * o_pad * 4)
    vmem_needed = 2 * w_bytes + tile_bytes
    vmem_limit = int(min(max(vmem_needed * 3 // 2 + (1 << 20), 16 << 20), 64 << 20))

    cost = pl.CostEstimate(
        flops=2 * B * (in_dim * h_pad + h_pad * o_pad),
        transcendentals=0,
        bytes_accessed=(B * in_dim * x.dtype.itemsize + w_bytes
                        + B * o_pad * jnp.dtype(out_dtype).itemsize),
    )

    out = pl.pallas_call(
        mlp_kernel,
        out_shape=jax.ShapeDtypeStruct((B, o_pad), out_dtype),
        grid=grid,
        in_specs=[
            pl.BlockSpec((tb, in_dim), lambda i: (i, 0)),      # x: tiled over B
            pl.BlockSpec((in_dim, h_pad), lambda i: (0, 0)),   # w1: VMEM-resident
            pl.BlockSpec((1, h_pad), lambda i: (0, 0)),        # b1: VMEM-resident
            pl.BlockSpec((h_pad, o_pad), lambda i: (0, 0)),    # w2: VMEM-resident
            pl.BlockSpec((1, o_pad), lambda i: (0, 0)),        # b2: VMEM-resident
        ],
        out_specs=pl.BlockSpec((tb, o_pad), lambda i: (i, 0)),
        compiler_params=pltpu.CompilerParams(
            dimension_semantics=("parallel",),                 # shard B across TCs
            vmem_limit_bytes=vmem_limit),
        cost_estimate=cost,
    )(x, w1_t, b1, w2_t, b2)

    if slice_output:
        # Optional: padded columns are exact zeros; skip this when the
        # consumer tolerates the o_pad-wide output to save an HBM copy.
        out = out[:, :out_dim]
    return out


def init_linear_params(key, in_features, out_features):
    """Deterministic init mimicking nn.Linear (uniform +/- 1/sqrt(in))."""
    kw, kb = jax.random.split(key)
    bound = 1.0 / jnp.sqrt(jnp.asarray(in_features, jnp.float32))
    w = jax.random.uniform(kw, (out_features, in_features), jnp.float32,
                           minval=-bound, maxval=bound)
    b = jax.random.uniform(kb, (out_features,), jnp.float32,
                           minval=-bound, maxval=bound)
    return w, b


if __name__ == "__main__":
    # Small shapes consistent with the module (hidden_dim=50 in the spec).
    batch = 8
    in_dim = 32
    hidden_dim = 50
    out_dim = 10

    key = jax.random.PRNGKey(0)
    kx, k1, k2 = jax.random.split(key, 3)

    x = jax.random.normal(kx, (batch, in_dim), jnp.float32)
    w1, b1 = init_linear_params(k1, in_dim, hidden_dim)
    w2, b2 = init_linear_params(k2, hidden_dim, out_dim)

    # One-time layout prep (transpose + lane-pad + bf16 cast). Not per-call.
    params = prepare_params(w1, b1, w2, b2)
    params = jax.tree_util.tree_map(
        lambda a: jax.block_until_ready(a) if isinstance(a, jax.Array) else a,
        params)

    out = multiclass_mlp(x, params)
    out = jax.block_until_ready(out)

    # Reference: plain-JAX f32 math (same as the PyTorch forward).  Tolerance
    # loosened because weights/activations are bf16 (accumulation stays f32).
    ref = jnp.maximum(x @ w1.T + b1, 0.0) @ w2.T + b2
    assert out.shape == (batch, out_dim)
    assert jnp.allclose(out, ref, atol=5e-2, rtol=5e-2), (
        float(jnp.max(jnp.abs(out - ref))))

    print("KERNEL_OK")
</pallas_src>

<mosaic_0001>
module attributes {stable_mosaic.version = 11 : i64} {
  func.func @mlp_kernel(%arg0: i32, %arg1: memref<8x32xf32, #tpu.memory_space<vmem>>, %arg2: memref<32x128xbf16, #tpu.memory_space<vmem>>, %arg3: memref<1x128xf32, #tpu.memory_space<vmem>>, %arg4: memref<128x128xbf16, #tpu.memory_space<vmem>>, %arg5: memref<1x128xf32, #tpu.memory_space<vmem>>, %arg6: memref<8x128xf32, #tpu.memory_space<vmem>>) attributes {dimension_semantics = [#tpu.dimension_semantics<parallel>], iteration_bounds = array<i64: 1>, scalar_prefetch = 0 : i64, scratch_operands = 0 : i64, tpu.core_type = #tpu.core_type<tc>, window_params = [{transform_indices = @transform_0, window_bounds = array<i64: 8, 32>}, {pipeline_mode = #tpu.pipeline_mode<synchronous>, transform_indices = @transform_1, window_bounds = array<i64: 32, 128>}, {pipeline_mode = #tpu.pipeline_mode<synchronous>, transform_indices = @transform_2, window_bounds = array<i64: 1, 128>}, {pipeline_mode = #tpu.pipeline_mode<synchronous>, transform_indices = @transform_3, window_bounds = array<i64: 128, 128>}, {pipeline_mode = #tpu.pipeline_mode<synchronous>, transform_indices = @transform_4, window_bounds = array<i64: 1, 128>}, {transform_indices = @transform_5, window_bounds = array<i64: 8, 128>}]} {
    %c0 = arith.constant 0 : index
    %c0_0 = arith.constant 0 : index
    %0 = vector.load %arg2[%c0, %c0_0] : memref<32x128xbf16, #tpu.memory_space<vmem>>, vector<32x128xbf16>
    %c0_1 = arith.constant 0 : index
    %c0_2 = arith.constant 0 : index
    %1 = vector.load %arg4[%c0_1, %c0_2] : memref<128x128xbf16, #tpu.memory_space<vmem>>, vector<128x128xbf16>
    %c0_3 = arith.constant 0 : index
    %c0_4 = arith.constant 0 : index
    %2 = vector.load %arg1[%c0_3, %c0_4] : memref<8x32xf32, #tpu.memory_space<vmem>>, vector<8x32xf32>
    %3 = arith.truncf %2 : vector<8x32xf32> to vector<8x32xbf16>
    %cst = arith.constant dense<0.000000e+00> : vector<8x128xf32>
    %4 = tpu.matmul %3, %0, %cst {dimension_numbers = #tpu.dot_dimension_numbers<[1], [0], [0], [1], [0, 0, 1, 1], [], []>} : vector<8x32xbf16>, vector<32x128xbf16>, vector<8x128xf32> -> vector<8x128xf32>
    %c0_5 = arith.constant 0 : index
    %c0_6 = arith.constant 0 : index
    %5 = vector.load %arg3[%c0_5, %c0_6] : memref<1x128xf32, #tpu.memory_space<vmem>>, vector<1x128xf32>
    %6 = vector.broadcast %5 : vector<1x128xf32> to vector<8x128xf32>
    %7 = arith.addf %4, %6 : vector<8x128xf32>
    %cst_7 = arith.constant 0.000000e+00 : f32
    %8 = vector.broadcast %cst_7 : f32 to vector<8x128xf32>
    %9 = arith.maximumf %7, %8 : vector<8x128xf32>
    %10 = arith.truncf %9 : vector<8x128xf32> to vector<8x128xbf16>
    %cst_8 = arith.constant dense<0.000000e+00> : vector<8x128xf32>
    %11 = tpu.matmul %10, %1, %cst_8 {dimension_numbers = #tpu.dot_dimension_numbers<[1], [0], [0], [1], [0, 0, 1, 1], [], []>} : vector<8x128xbf16>, vector<128x128xbf16>, vector<8x128xf32> -> vector<8x128xf32>
    %c0_9 = arith.constant 0 : index
    %c0_10 = arith.constant 0 : index
    %12 = vector.load %arg5[%c0_9, %c0_10] : memref<1x128xf32, #tpu.memory_space<vmem>>, vector<1x128xf32>
    %13 = vector.broadcast %12 : vector<1x128xf32> to vector<8x128xf32>
    %14 = arith.addf %11, %13 : vector<8x128xf32>
    %c0_11 = arith.constant 0 : index
    %c0_12 = arith.constant 0 : index
    %15 = vector.load %arg6[%c0_11, %c0_12] : memref<8x128xf32, #tpu.memory_space<vmem>>, vector<8x128xf32>
    tpu.vector_store %arg6[%c0_11, %c0_12], %14 {strides = array<i32>} : memref<8x128xf32, #tpu.memory_space<vmem>>, vector<8x128xf32>,
    return
  }
  func.func @transform_0(%arg0: i32) -> (i32, i32) {
    %c0_i32 = arith.constant 0 : i32
    %c0_i32_0 = arith.constant 0 : i32
    return %arg0, %c0_i32 : i32, i32
  }
  func.func @transform_1(%arg0: i32) -> (i32, i32) {
    %c0_i32 = arith.constant 0 : i32
    %c0_i32_0 = arith.constant 0 : i32
    %c0_i32_1 = arith.constant 0 : i32
    return %c0_i32, %c0_i32_0 : i32, i32
  }
  func.func @transform_2(%arg0: i32) -> (i32, i32) {
    %c0_i32 = arith.constant 0 : i32
    %c0_i32_0 = arith.constant 0 : i32
    %c0_i32_1 = arith.constant 0 : i32
    return %c0_i32, %c0_i32_0 : i32, i32
  }
  func.func @transform_3(%arg0: i32) -> (i32, i32) {
    %c0_i32 = arith.constant 0 : i32
    %c0_i32_0 = arith.constant 0 : i32
    %c0_i32_1 = arith.constant 0 : i32
    return %c0_i32, %c0_i32_0 : i32, i32
  }
  func.func @transform_4(%arg0: i32) -> (i32, i32) {
    %c0_i32 = arith.constant 0 : i32
    %c0_i32_0 = arith.constant 0 : i32
    %c0_i32_1 = arith.constant 0 : i32
    return %c0_i32, %c0_i32_0 : i32, i32
  }
  func.func @transform_5(%arg0: i32) -> (i32, i32) {
    %c0_i32 = arith.constant 0 : i32
    %c0_i32_0 = arith.constant 0 : i32
    return %arg0, %c0_i32 : i32, i32
  }
}

</mosaic_0001>

<bundles_post_ra>
// kernel: tpu_custom_call.1
= control target key start
LH: loop header
LB: loop body
LE: loop exit
PB: predicated region body
PF: predicated region fallthrough
CT: control target
= control target key end

     0   :  { %10 = vsyncpa [#allocation3], 0  ;;  %s423_s0 = inlined_call_operand.hbm [shape: f32[8,32], index: 0, kind: input, shape index: {}]   ;;  %s424_s1 = inlined_call_operand.hbm [shape: bf16[32,128], index: 1, kind: input, shape index: {}]   ;;  %s425_s2 = inlined_call_operand.vmem [shape: f32[1,128], index: 2, kind: input, shape index: {}]   ;;  %s426_s3 = inlined_call_operand.hbm [shape: bf16[128,128], index: 3, kind: input, shape index: {}]   ;;  %s427_s4 = inlined_call_operand.vmem [shape: f32[1,128], index: 4, kind: input, shape index: {}]   ;;  %s428_s5 = inlined_call_operand.hbm [shape: f32[8,128], index: 5, kind: output, shape index: {}]  }
   0x1   :  { %11 = vsyncpa [#allocation6], 0  ;;  %s28_s20 = sshll.u32 %s424_s1, 4  ;;  %s29_s20 = int_to_ptr.hbm [resolvable:$true] %s28_s20 }
   0x2   :  { %12 = vsyncpa [#allocation4], 0  ;;  %s369_s21 = smov [#allocation5]   ;;  %s18_s25 = sshll.u32 %s423_s0, 4  ;;  %s19_s25 = int_to_ptr.hbm [resolvable:$true] %s18_s25 }
   0x3   :  { %s30_s22 = sshll.u32 %s369_s21, 4  ;;  %s370_s26 = smov 64   ;;  %s31_s22 = int_to_ptr.vmem [resolvable:$true] %s30_s22 }
   0x4   :  { %s371_s27 = smov 4   ;;  %s372_s28 = smov [#allocation2]  }
   0x5   :  { %36 = dma.hbm_to_vmem [thread:$0]  %s29_s20, 256, %s31_s22, [#allocation6], %s370_s26, %s370_s26, %s371_s27  }
   0x6   :  { %s20_s29 = sshll.u32 %s372_s28, 4  ;;  %s43_s7 = sshll.u32 %s426_s3, 4  ;;  %s21_s29 = int_to_ptr.vmem [resolvable:$true] %s20_s29  ;;  %s44_s7 = int_to_ptr.hbm [resolvable:$true] %s43_s7 }
   0x7   :  { %23 = dma.hbm_to_vmem [thread:$0]  %s19_s25, 128, %s21_s29, [#allocation3]  }
   0x8   :  { %s373_s1 = smov [#allocation7]  }
   0x9   :  { %s45_s8 = sshll.u32 %s373_s1, 4  ;;  %s46_s8 = int_to_ptr.vmem [resolvable:$true] %s45_s8 }
   0xa   :  { %51 = dma.hbm_to_vmem [thread:$0]  %s44_s7, 1024, %s46_s8, [#allocation6], %s370_s26, %s370_s26, %s371_s27  }
   0xb   :  { %363 = dma.done.wait [#allocation3], 128  }
   0xc   :  { %364 = vsyncadd [#allocation3], 4294967168 }
   0xd   :  { %365 = dma.done.wait [#allocation6], 1280  }
   0xe   :  { %366 = vsyncadd [#allocation6], 4294966016  ;;  %v250_v0 = vld [vmem:[#allocation5 + $0x8] sm:$0xff]  ;;  %v249_v2 = vld [vmem:[#allocation5] sm:$0xff]  ;;  %vm105_vm0 = vcmask 261120   ;;  %s374_s11 = smov [#allocation8]  }
   0xf   :  { %v258_v1 = vld [vmem:[#allocation7 + $0x38] sm:$0xff]  ;;  %115 = vmatpush.bf16.msra.mxu0 %v250_v0  ;;  %v87_v3 = vld [vmem:[#allocation2] sm:$0xff]  ;;  %v257_v4 = vld [vmem:[#allocation7 + $0x30] sm:$0xff]  ;;  %s195_s12 = sshll.u32 %s374_s11, 4  ;;  %s197_s15 = sshll.u32 %s428_s5, 4  ;;  %s196_s12 = int_to_ptr.vmem [resolvable:$true] %s195_s12  ;;  %s198_s15 = int_to_ptr.hbm [resolvable:$true] %s197_s15 }
  0x10   :  { %176 = vmatpush.bf16.msra.mxu1 %v258_v1  ;;  %v88_v5 = vpack.c.bf16 %v87_v3, %v87_v3  ;;  %v256_v6 = vld [vmem:[#allocation7 + $0x28] sm:$0xff]  ;;  %v255_v7 = vld [vmem:[#allocation7 + $0x20] sm:$0xff]  ;;  %v254_v8 = vld [vmem:[#allocation7 + $0x18] sm:$0xff] }
  0x11   :  { %v253_v9 = vld [vmem:[#allocation7 + $0x10] sm:$0xff]  ;;  %v252_v10 = vld [vmem:[#allocation7 + $0x8] sm:$0xff]  ;;  %v251_v11 = vld [vmem:[#allocation7] sm:$0xff] }
  0x12   :  { %v265_v12 = vld [vmem:[%s425_s2] ss:$0 sm:$0xff] }
  0x13   :  { %116 = vmatpush.bf16.msra.mxu0 %v249_v2  ;;  %v266_v18 = vld [vmem:[%s427_s4] ss:$0 sm:$0xff] }
  0x14   :  { %177 = vmatpush.bf16.msra.mxu1 %v257_v4 }
  0x16   :  { %216 = vmatmul.msk.bf16.vlgmr.msra.gmra.mxu0 %vm105_vm0, %v88_v5 }
  0x18   :  { %178 = vmatpush.bf16.msra.mxu1 %v256_v6 }
  0x1c   :  { %179 = vmatpush.bf16.msra.mxu1 %v255_v7 }
  0x20   :  { %180 = vmatpush.bf16.msra.mxu1 %v254_v8 }
  0x24   :  { %181 = vmatpush.bf16.msra.mxu1 %v253_v9 }
  0x28   :  { %182 = vmatpush.bf16.msra.mxu1 %v252_v10 }
  0x2c   :  { %183 = vmatpush.bf16.msra.mxu1 %v251_v11 }
  0x93   :  { %v118_v13 = vpop.f32.mrf.mxu0 }
  0x94   :  { %v119_v14 = vadd.f32 %v265_v12, %v118_v13 }
  0x96   :  { %v122_v15 = vmax.f32 %v119_v14, 0.0 }
  0x98   :  { %v123_v16 = vpack.c.bf16 %v122_v15, %v122_v15 }
  0x9a   :  { %184 = vmatmul.bf16.vlgmr.msra.gmra.mxu1 %v123_v16 }
  0x9b   :  { %v120_v17 = vpop.f32.mrf.mxu0 }
 0x117   :  { %v185_v19 = vpop.f32.mrf.mxu1 }
 0x118   :  { %v186_v20 = vadd.f32 %v266_v18, %v185_v19 }
 0x11a   :  { %189 = vst [vmem:[#allocation8] sm:$0xff] %v186_v20 }
 0x11b   :  { %200 = dma.vmem_to_hbm [thread:$0]  %s196_s12, 128, %s198_s15, [#allocation4]  }
 0x11f   :  { %v187_v21 = vpop.f32.mrf.mxu1 }
 0x120   :  { %367 = dma.done.wait [#allocation4], 128  }
 0x121   :  { %368 = vsyncadd [#allocation4], 4294967168 }
 0x122   :  { %205 = vsyncpa [#allocation3], 1 }
 0x123   :  { %206 = vsyncpa [#allocation6], 1 }
 0x124   :  { %207 = vsyncpa [#allocation4], 1 }

</bundles_post_ra>
